<compile_context>
chip_gen: v6e
topology: v6e:2x2x1
jax: 0.10.0
libtpu: 0.0.40
codegen_flags: <defaults>
</compile_context>

<pallas_src>
import functools

import jax
import jax.numpy as jnp
from jax.experimental import pallas as pl
from jax.experimental.pallas import tpu as pltpu


def _round_up(n, m):
    return ((n + m - 1) // m) * m


# ------------------------------ Pallas kernel ------------------------------ #

def _fused_id_loss_kernel(cols_ref, wc_ref, wl_ref, o_ref,
                          *, hw, inv_hw, inv_count):
    """Fused: conv(im2col matmul)+ReLU -> global-avg-pool -> linear -> dot/B.

    cols_ref : (2*HW, K) bf16  stacked im2col patches, rows [0:HW] = y_hat,
                               rows [HW:2*HW] = y (real K = C*9, unpadded)
    wc_ref   : (K, Fp)  bf16   conv weight, output channels zero-padded to Fp
    wl_ref   : (Fp, Dp) f32    linear weight, zero-padded
    o_ref    : (1, 1)   f32    scalar loss
    """
    # One long MXU matmul for BOTH images (single weight push, M = 2*HW),
    # bf16 operands with f32 accumulation; fused ReLU in f32.
    conv = jnp.maximum(
        jnp.dot(cols_ref[...], wc_ref[...],
                preferred_element_type=jnp.float32), 0.0)         # (2*HW, Fp)

    # Global average pool per image: split the two row-halves and row-sum.
    fp = conv.shape[-1]
    pooled = conv.reshape(2, hw, fp).sum(axis=1) * inv_hw          # (2, Fp)

    # Tiny f32 linear projection to the embedding (stays in VMEM).
    feats = jnp.dot(pooled, wl_ref[...],
                    preferred_element_type=jnp.float32)            # (2, Dp)

    # PyTorch loop semantics: sim = y_hat_feats[B-1].dot(y_feats[B-1]); /count
    sim = jnp.sum(feats[0:1, :] * feats[1:2, :], axis=-1, keepdims=True)
    o_ref[...] = sim * inv_count


def fused_id_loss_call(cols, wc, wl, *, hw, count):
    M, K = cols.shape
    Fp = wc.shape[1]
    Dp = wl.shape[1]
    kernel = functools.partial(_fused_id_loss_kernel,
                               hw=hw,
                               inv_hw=1.0 / float(hw),
                               inv_count=1.0 / float(count))
    out = pl.pallas_call(
        kernel,
        out_shape=jax.ShapeDtypeStruct((1, 1), jnp.float32),
        grid=(1,),                                 # whole problem fits VMEM
        in_specs=[
            pl.BlockSpec((M, K), lambda i: (0, 0)),     # full-array, real K
            pl.BlockSpec((K, Fp), lambda i: (0, 0)),
            pl.BlockSpec((Fp, Dp), lambda i: (0, 0)),
        ],
        out_specs=pl.BlockSpec((1, 1), lambda i: (0, 0)),
        compiler_params=pltpu.CompilerParams(
            dimension_semantics=("arbitrary",),
            vmem_limit_bytes=32 * 1024 * 1024),
    )(cols, wc, wl)
    return out[0, 0]


# --------------------------- host-side glue (JAX) --------------------------- #

def _im2col_3x3_same(x):
    """x: (B, C, H, W) NCHW -> (B*H*W, C*9) im2col matrix (padding=1)."""
    B, C, H, W = x.shape
    xp = jnp.pad(x, ((0, 0), (0, 0), (1, 1), (1, 1)))
    patches = []
    for dh in range(3):
        for dw in range(3):
            patches.append(xp[:, :, dh:dh + H, dw:dw + W])   # (B, C, H, W)
    p = jnp.stack(patches, axis=2)                           # (B, C, 9, H, W)
    return p.transpose(0, 3, 4, 1, 2).reshape(B * H * W, C * 9)


def make_params(C, F, D, key):
    k1, k2 = jax.random.split(key)
    w_conv = jax.random.normal(k1, (F, C, 3, 3), jnp.float32) * 0.1
    w_lin = jax.random.normal(k2, (F, D), jnp.float32) * 0.1
    return w_conv, w_lin


def pack_id_loss_params(w_conv, w_lin):
    """One-time weight packing (hoisted out of the per-call path).

    Output-channel / embedding dims are zero-padded to 128 so intermediates
    are lane-dense; the contraction dim K = C*9 is kept at its real size.
    """
    F, C = w_conv.shape[0], w_conv.shape[1]
    K = C * 9
    D = w_lin.shape[1]
    Fp, Dp = _round_up(F, 128), _round_up(D, 128)
    wc = jnp.zeros((K, Fp), jnp.float32)
    wc = wc.at[:, :F].set(w_conv.reshape(F, K).T).astype(jnp.bfloat16)
    wl = jnp.zeros((Fp, Dp), jnp.float32).at[:F, :D].set(w_lin)
    return wc, wl


@jax.jit
def id_loss(y_hat, y, wc_packed, wl_packed):
    """Pallas-fused IDLoss forward. y_hat, y: (B, C, H, W) NCHW.

    Only the last batch item contributes to the loss (the PyTorch loop
    overwrites `sim`), so only that image is embedded; /B scale is kept.
    """
    B, C, H, W = y.shape
    # Stack (y_hat[B-1], y[B-1]) so a single im2col + a single kernel matmul
    # covers both images (rows [0:HW] = y_hat, [HW:2HW] = y).
    x2 = jnp.stack([y_hat[B - 1], y[B - 1]], axis=0)              # (2, C, H, W)
    cols = _im2col_3x3_same(x2).astype(jnp.bfloat16)              # (2*HW, C*9)
    return fused_id_loss_call(cols, wc_packed, wl_packed, hw=H * W, count=B)


# --------------------------- pure-JAX reference ----------------------------- #

def ref_id_loss(y_hat, y, w_conv, w_lin):
    """Full-batch reference with the original module's semantics (the conv
    matmul mirrors the kernel's bf16 operand rounding)."""
    B, C, H, W = y.shape
    F = w_conv.shape[0]
    K = C * 9
    wc = w_conv.reshape(F, K).T
    wc_bf = wc.astype(jnp.bfloat16).astype(jnp.float32)

    def embed(x):
        cols = _im2col_3x3_same(x)
        cols_bf = cols.astype(jnp.bfloat16).astype(jnp.float32)
        conv = jnp.maximum(cols_bf @ wc_bf, 0.0)
        pooled = conv.reshape(B, H * W, F).mean(axis=1)
        return pooled @ w_lin

    y_feats = embed(y)
    y_hat_feats = embed(y_hat)
    sim = jnp.dot(y_hat_feats[B - 1], y_feats[B - 1])   # loop keeps last sim
    return sim / B                                      # count == B


# ---------------------------------- main ------------------------------------ #

if __name__ == "__main__":
    B, C, H, W = 2, 4, 16, 16   # small NCHW inputs
    F, D = 32, 32               # conv channels, embedding dim

    key = jax.random.PRNGKey(0)
    kx, ky, kp = jax.random.split(key, 3)
    y_hat = jax.random.normal(kx, (B, C, H, W), jnp.float32)
    y = jax.random.normal(ky, (B, C, H, W), jnp.float32)
    w_conv, w_lin = make_params(C, F, D, kp)

    # One-time weight packing (would be done at module init in a real model).
    wc_packed, wl_packed = pack_id_loss_params(w_conv, w_lin)
    wc_packed, wl_packed = jax.block_until_ready((wc_packed, wl_packed))

    loss = jax.block_until_ready(id_loss(y_hat, y, wc_packed, wl_packed))

    ref = ref_id_loss(y_hat, y, w_conv, w_lin)
    assert jnp.allclose(loss, ref, rtol=5e-3, atol=1e-4), (loss, ref)

    print("KERNEL_OK")
</pallas_src>

<mosaic_0001>
module attributes {stable_mosaic.version = 11 : i64} {
  func.func @_fused_id_loss_kernel(%arg0: i32, %arg1: memref<512x36xbf16, #tpu.memory_space<vmem>>, %arg2: memref<36x128xbf16, #tpu.memory_space<vmem>>, %arg3: memref<128x128xf32, #tpu.memory_space<vmem>>, %arg4: memref<1x1xf32, #tpu.memory_space<vmem>>) attributes {dimension_semantics = [#tpu.dimension_semantics<arbitrary>], iteration_bounds = array<i64: 1>, scalar_prefetch = 0 : i64, scratch_operands = 0 : i64, tpu.core_type = #tpu.core_type<tc>, window_params = [{pipeline_mode = #tpu.pipeline_mode<synchronous>, transform_indices = @transform_0, window_bounds = array<i64: 512, 36>}, {pipeline_mode = #tpu.pipeline_mode<synchronous>, transform_indices = @transform_1, window_bounds = array<i64: 36, 128>}, {pipeline_mode = #tpu.pipeline_mode<synchronous>, transform_indices = @transform_2, window_bounds = array<i64: 128, 128>}, {pipeline_mode = #tpu.pipeline_mode<synchronous>, transform_indices = @transform_3, window_bounds = array<i64: 1, 1>}]} {
    %c0 = arith.constant 0 : index
    %c0_0 = arith.constant 0 : index
    %0 = vector.load %arg1[%c0, %c0_0] : memref<512x36xbf16, #tpu.memory_space<vmem>>, vector<512x36xbf16>
    %c0_1 = arith.constant 0 : index
    %c0_2 = arith.constant 0 : index
    %1 = vector.load %arg2[%c0_1, %c0_2] : memref<36x128xbf16, #tpu.memory_space<vmem>>, vector<36x128xbf16>
    %cst = arith.constant dense<0.000000e+00> : vector<512x128xf32>
    %2 = tpu.matmul %0, %1, %cst {dimension_numbers = #tpu.dot_dimension_numbers<[1], [0], [0], [1], [0, 0, 1, 1], [], []>} : vector<512x36xbf16>, vector<36x128xbf16>, vector<512x128xf32> -> vector<512x128xf32>
    %cst_3 = arith.constant 0.000000e+00 : f32
    %3 = vector.broadcast %cst_3 : f32 to vector<512x128xf32>
    %4 = arith.maximumf %2, %3 : vector<512x128xf32>
    %5 = vector.shape_cast %4 : vector<512x128xf32> to vector<2x256x128xf32>
    %cst_4 = arith.constant dense<0.000000e+00> : vector<2x128xf32>
    %6 = vector.multi_reduction <add>, %5, %cst_4 [1] : vector<2x256x128xf32> to vector<2x128xf32>
    %cst_5 = arith.constant 3.906250e-03 : f32
    %7 = vector.broadcast %cst_5 : f32 to vector<2x128xf32>
    %8 = arith.mulf %6, %7 : vector<2x128xf32>
    %c0_6 = arith.constant 0 : index
    %c0_7 = arith.constant 0 : index
    %9 = vector.load %arg3[%c0_6, %c0_7] : memref<128x128xf32, #tpu.memory_space<vmem>>, vector<128x128xf32>
    %cst_8 = arith.constant dense<0.000000e+00> : vector<2x128xf32>
    %10 = tpu.matmul %8, %9, %cst_8 {dimension_numbers = #tpu.dot_dimension_numbers<[1], [0], [0], [1], [0, 0, 1, 1], [], []>} : vector<2x128xf32>, vector<128x128xf32>, vector<2x128xf32> -> vector<2x128xf32>
    %11 = vector.extract_strided_slice %10 {offsets = [0, 0], sizes = [1, 128], strides = [1, 1]} : vector<2x128xf32> to vector<1x128xf32>
    %12 = vector.extract_strided_slice %10 {offsets = [1, 0], sizes = [1, 128], strides = [1, 1]} : vector<2x128xf32> to vector<1x128xf32>
    %13 = arith.mulf %11, %12 : vector<1x128xf32>
    %cst_9 = arith.constant dense<0.000000e+00> : vector<1xf32>
    %14 = vector.multi_reduction <add>, %13, %cst_9 [1] : vector<1x128xf32> to vector<1xf32>
    %15 = vector.shape_cast %14 : vector<1xf32> to vector<1x1xf32>
    %cst_10 = arith.constant 5.000000e-01 : f32
    %16 = vector.broadcast %cst_10 : f32 to vector<1x1xf32>
    %17 = arith.mulf %15, %16 : vector<1x1xf32>
    %c0_11 = arith.constant 0 : index
    %c0_12 = arith.constant 0 : index
    %18 = vector.load %arg4[%c0_11, %c0_12] : memref<1x1xf32, #tpu.memory_space<vmem>>, vector<1x1xf32>
    tpu.vector_store %arg4[%c0_11, %c0_12], %17 {strides = array<i32>} : memref<1x1xf32, #tpu.memory_space<vmem>>, vector<1x1xf32>,
    return
  }
  func.func @transform_0(%arg0: i32) -> (i32, i32) {
    %c0_i32 = arith.constant 0 : i32
    %c0_i32_0 = arith.constant 0 : i32
    %c0_i32_1 = arith.constant 0 : i32
    return %c0_i32, %c0_i32_0 : i32, i32
  }
  func.func @transform_1(%arg0: i32) -> (i32, i32) {
    %c0_i32 = arith.constant 0 : i32
    %c0_i32_0 = arith.constant 0 : i32
    %c0_i32_1 = arith.constant 0 : i32
    return %c0_i32, %c0_i32_0 : i32, i32
  }
  func.func @transform_2(%arg0: i32) -> (i32, i32) {
    %c0_i32 = arith.constant 0 : i32
    %c0_i32_0 = arith.constant 0 : i32
    %c0_i32_1 = arith.constant 0 : i32
    return %c0_i32, %c0_i32_0 : i32, i32
  }
  func.func @transform_3(%arg0: i32) -> (i32, i32) {
    %c0_i32 = arith.constant 0 : i32
    %c0_i32_0 = arith.constant 0 : i32
    %c0_i32_1 = arith.constant 0 : i32
    return %c0_i32, %c0_i32_0 : i32, i32
  }
}

</mosaic_0001>

<bundles_post_ra>
// kernel: id_loss.1
= control target key start
LH: loop header
LB: loop body
LE: loop exit
PB: predicated region body
PF: predicated region fallthrough
CT: control target
= control target key end

     0   :  { %vm357_vm0 = vcmask 1041408   ;;  %vm260_vm1 = vcmask 293888   ;;  %s1460_s0 = inlined_call_operand.vmem [shape: bf16[512,36], index: 0, kind: input, shape index: {}]   ;;  %s1461_s1 = inlined_call_operand.vmem [shape: bf16[36,128], index: 1, kind: input, shape index: {}]   ;;  %s1462_s2 = inlined_call_operand.vmem [shape: f32[128,128], index: 2, kind: input, shape index: {}]   ;;  %s1463_s3 = inlined_call_operand.hbm [shape: f32[1,1], index: 3, kind: output, shape index: {}]  }
   0x1   :  { %v1141_v0 = vld [vmem:[%s1461_s1 + $0x10] ss:$0 sps:$4 sm:$0x33]   ;;  %v1142_v1 = vld [vmem:[%s1461_s1 + $0x8] sm:$0xff]   ;;  %v1144_v3 = vld [vmem:[%s1460_s0] sm:$0xff]  }
   0x2   :  { %1136 = vmatprep.subr.msk.bf16.mxu0 %vm357_vm0, %v1141_v0  ;;  %v359_v2 = vsel %vm357_vm0, %v1141_v0, 0  ;;  %1137 = vmatprep.subr.msk.bf16.mxu1 %vm357_vm0, %v1141_v0  ;;  %v1143_v4 = vld [vmem:[%s1461_s1] sm:$0xff]   ;;  %v1145_v5 = vld [vmem:[%s1460_s0 + $0x8] sm:$0xff]   ;;  %v1146_v6 = vld [vmem:[%s1460_s0 + $0x10] sm:$0xff]  }
   0x3   :  { %1026 = vmatpush3.bf16.msra.mxu0 %v359_v2  ;;  %1133 = vmatpush3.bf16.msra.mxu1 %v359_v2  ;;  %v1147_v7 = vld [vmem:[%s1460_s0 + $0x18] sm:$0xff]   ;;  %v1148_v8 = vld [vmem:[%s1460_s0 + $0x20] sm:$0xff]   ;;  %v1162_v9 = vld [vmem:[%s1460_s0 + $0x90] sm:$0xff]  }
   0x4   :  { %1027 = vmatprep.subr.bf16.mxu0 %v1142_v1  ;;  %1131 = vmatprep.subr.bf16.mxu1 %v1142_v1  ;;  %v1163_v10 = vld [vmem:[%s1460_s0 + $0x98] sm:$0xff]   ;;  %v1164_v11 = vld [vmem:[%s1460_s0 + $0xa0] sm:$0xff]   ;;  %v1149_v12 = vld [vmem:[%s1460_s0 + $0x28] sm:$0xff]  }
   0x5   :  { %1031 = vmatprep.mubr.msk.bf16.mxu0 %vm260_vm1, %v1144_v3  ;;  %1067 = vmatprep.mubr.msk.bf16.mxu1 %vm260_vm1, %v1162_v9  ;;  %v1150_v13 = vld [vmem:[%s1460_s0 + $0x30] sm:$0xff]   ;;  %v1165_v14 = vld [vmem:[%s1460_s0 + $0xa8] sm:$0xff]   ;;  %v1151_v16 = vld [vmem:[%s1460_s0 + $0x38] sm:$0xff]  }
   0x6   :  { %v1166_v15 = vld [vmem:[%s1460_s0 + $0xb0] sm:$0xff]   ;;  %v1152_v17 = vld [vmem:[%s1460_s0 + $0x40] sm:$0xff]  }
   0x7   :  { %1028 = vmatpush3.bf16.msra.mxu0 %v1142_v1  ;;  %1134 = vmatpush3.bf16.msra.mxu1 %v1142_v1 }
   0x8   :  { %1029 = vmatprep.subr.bf16.mxu0 %v1143_v4  ;;  %1132 = vmatprep.subr.bf16.mxu1 %v1143_v4 }
   0xb   :  { %1030 = vmatpush3.bf16.msra.mxu0 %v1143_v4  ;;  %1135 = vmatpush3.bf16.msra.mxu1 %v1143_v4 }
   0xe   :  { %1032 = vmatmul.mubr.msk.bf16.vlgmr.msra.gmra.mxu0 %vm260_vm1, %v1145_v5  ;;  %1068 = vmatmul.mubr.msk.bf16.vlgmr.msra.gmra.mxu1 %vm260_vm1, %v1163_v10 }
   0xf   :  { %1035 = vmatprep.mubr.msk.bf16.mxu0 %vm260_vm1, %v1146_v6  ;;  %1071 = vmatprep.mubr.msk.bf16.mxu1 %vm260_vm1, %v1164_v11 }
  0x16   :  { %1036 = vmatmul.mubr.msk.bf16.gmra.mxu0 %vm260_vm1, %v1147_v7  ;;  %1072 = vmatmul.mubr.msk.bf16.gmra.mxu1 %vm260_vm1, %v1165_v14 }
  0x17   :  { %1039 = vmatprep.mubr.msk.bf16.mxu0 %vm260_vm1, %v1148_v8  ;;  %1075 = vmatprep.mubr.msk.bf16.mxu1 %vm260_vm1, %v1166_v15 }
  0x1e   :  { %1040 = vmatmul.mubr.msk.bf16.gmra.mxu0 %vm260_vm1, %v1149_v12 }
  0x1f   :  { %1043 = vmatprep.mubr.msk.bf16.mxu0 %vm260_vm1, %v1150_v13 }
  0x20   :  { %8 = vsyncpa [#allocation3], 0  ;;  %v1167_v18 = vld [vmem:[%s1460_s0 + $0xb8] sm:$0xff]   ;;  %v1168_v19 = vld [vmem:[%s1460_s0 + $0xc0] sm:$0xff]   ;;  %v1198_v37 = vmov 0.0   ;;  %vm1199_vm2 = vmmov 0  }
  0x21   :  { %1076 = vmatmul.mubr.msk.bf16.gmra.mxu1 %vm260_vm1, %v1167_v18  ;;  %v1153_v20 = vld [vmem:[%s1460_s0 + $0x48] sm:$0xff]   ;;  %v1154_v21 = vld [vmem:[%s1460_s0 + $0x50] sm:$0xff]   ;;  %v1155_v24 = vld [vmem:[%s1460_s0 + $0x58] sm:$0xff]   ;;  %1095 = vmatprep.subr.mxu1 %v1198_v37  ;;  %vm808_vm3 = vcmask 1041409   ;;  %vm885_vm4 = vcmask 1040384   ;;  %vm890_vm5 = vcmask 0  }
  0x22   :  { %1079 = vmatprep.mubr.msk.bf16.mxu1 %vm260_vm1, %v1168_v19  ;;  %v1169_v22 = vld [vmem:[%s1460_s0 + $0xc8] sm:$0xff]   ;;  %v1170_v23 = vld [vmem:[%s1460_s0 + $0xd0] sm:$0xff]   ;;  %v1156_v25 = vld [vmem:[%s1460_s0 + $0x60] sm:$0xff]  }
  0x23   :  { %v1171_v26 = vld [vmem:[%s1460_s0 + $0xd8] sm:$0xff]   ;;  %v1172_v27 = vld [vmem:[%s1460_s0 + $0xe0] sm:$0xff]   ;;  %v1157_v28 = vld [vmem:[%s1460_s0 + $0x68] sm:$0xff]  }
  0x24   :  { %v1158_v29 = vld [vmem:[%s1460_s0 + $0x70] sm:$0xff]   ;;  %v1173_v30 = vld [vmem:[%s1460_s0 + $0xe8] sm:$0xff]   ;;  %v1159_v32 = vld [vmem:[%s1460_s0 + $0x78] sm:$0xff]  }
  0x25   :  { %v1174_v31 = vld [vmem:[%s1460_s0 + $0xf0] sm:$0xff]   ;;  %v1160_v33 = vld [vmem:[%s1460_s0 + $0x80] sm:$0xff]   ;;  %v1175_v34 = vld [vmem:[%s1460_s0 + $0xf8] sm:$0xff]  }
  0x26   :  { %1044 = vmatmul.mubr.msk.bf16.gmra.mxu0 %vm260_vm1, %v1151_v16  ;;  %v1161_v35 = vld [vmem:[%s1460_s0 + $0x88] sm:$0xff]   ;;  %v805_v36 = vld [vmem:[%s1462_s2 + $0x78] sm:$0xff]  ;;  %v804_v38 = vld [vmem:[%s1462_s2 + $0x70] sm:$0xff] }
  0x27   :  { %1047 = vmatprep.mubr.msk.bf16.mxu0 %vm260_vm1, %v1152_v17  ;;  %1096 = vmatpush3.msra.mxu1 %v805_v36  ;;  %v803_v39 = vld [vmem:[%s1462_s2 + $0x68] sm:$0xff]  ;;  %v802_v40 = vld [vmem:[%s1462_s2 + $0x60] sm:$0xff]  ;;  %v801_v41 = vld [vmem:[%s1462_s2 + $0x58] sm:$0xff] }
  0x28   :  { %1097 = vmatprep.subr.mxu1 %v1198_v37  ;;  %v800_v42 = vld [vmem:[%s1462_s2 + $0x50] sm:$0xff]  ;;  %v799_v43 = vld [vmem:[%s1462_s2 + $0x48] sm:$0xff]  ;;  %v798_v44 = vld [vmem:[%s1462_s2 + $0x40] sm:$0xff] }
  0x29   :  { %1080 = vmatmul.mubr.msk.bf16.gmra.mxu1 %vm260_vm1, %v1169_v22  ;;  %v797_v49 = vld [vmem:[%s1462_s2 + $0x38] sm:$0xff]  ;;  %v796_v53 = vld [vmem:[%s1462_s2 + $0x30] sm:$0xff]  ;;  %v795_v57 = vld [vmem:[%s1462_s2 + $0x28] sm:$0xff] }
  0x2a   :  { %1083 = vmatprep.mubr.msk.bf16.mxu1 %vm260_vm1, %v1170_v23  ;;  %1098 = vmatpush3.msra.mxu1 %v804_v38  ;;  %v794_v61 = vld [vmem:[%s1462_s2 + $0x20] sm:$0xff]  ;;  %v793_v1 = vld [vmem:[%s1462_s2 + $0x18] sm:$0xff]  ;;  %v792_v4 = vld [vmem:[%s1462_s2 + $0x10] sm:$0xff] }
  0x2b   :  { %1099 = vmatprep.subr.mxu1 %v1198_v37  ;;  %v791_v7 = vld [vmem:[%s1462_s2 + $0x8] sm:$0xff]  ;;  %v790_v11 = vld [vmem:[%s1462_s2] sm:$0xff]  ;;  %s1200_s2 = smov [#allocation2]  }
  0x2c   :  { %1100 = vmatpush3.msra.mxu1 %v803_v39  ;;  %s898_s28 = sshll.u32 %s1200_s2, 4  ;;  %s899_s28 = int_to_ptr.vmem [resolvable:$true] %s898_s28 }
  0x2d   :  { %1101 = vmatprep.subr.mxu1 %v1198_v37  ;;  %s1176_s0 = scalar_lea.vmem %s899_s28, 16  ;;  %s1180_s29 = scalar_lea.vmem %s899_s28, 32 }
  0x2e   :  { %1048 = vmatmul.mubr.msk.bf16.gmra.mxu0 %vm260_vm1, %v1153_v20  ;;  %1102 = vmatpush3.msra.mxu1 %v802_v40  ;;  %p1177_p0 = scmp.ne.s32.totalorder %s899_s28, %s1176_s0  ;;  %p1181_p1 = scmp.lt.s32.totalorder %s899_s28, %s899_s28 }
  0x2f   :  { %1051 = vmatprep.mubr.msk.bf16.mxu0 %vm260_vm1, %v1154_v21  ;;  %1103 = vmatprep.subr.mxu1 %v1198_v37  ;;  %p1182_p2 = scmp.lt.s32.totalorder %s1180_s29, %s1176_s0 }
  0x30   :  { %1104 = vmatpush3.msra.mxu1 %v801_v41 }
  0x31   :  { %1084 = vmatmul.mubr.msk.bf16.gmra.mxu1 %vm260_vm1, %v1171_v26  ;;  %1105 = vmatprep.subr.mxu1 %v1198_v37  ;;  %p1183_p3 = por %p1182_p2, %p1181_p1 }
  0x32   :  { %1087 = vmatprep.mubr.msk.bf16.mxu1 %vm260_vm1, %v1172_v27  ;;  %1106 = vmatpush3.msra.mxu1 %v800_v42 }
  0x33   :  { %1107 = vmatprep.subr.mxu1 %v1198_v37  ;;  %p1184_p4 = pnand %p1183_p3, %p1177_p0 }
  0x34   :  { %1108 = vmatpush3.msra.mxu1 %v799_v43 }
  0x35   :  { %1109 = vmatprep.subr.mxu1 %v1198_v37 }
  0x36   :  { %1052 = vmatmul.mubr.msk.bf16.gmra.mxu0 %vm260_vm1, %v1155_v24  ;;  %1110 = vmatpush3.msra.mxu1 %v798_v44 }
  0x37   :  { %1055 = vmatprep.mubr.msk.bf16.mxu0 %vm260_vm1, %v1156_v25  ;;  %1111 = vmatprep.subr.mxu1 %v1198_v37 }
  0x38   :  { %1112 = vmatpush3.msra.mxu1 %v797_v49 }
  0x39   :  { %1088 = vmatmul.mubr.msk.bf16.gmra.mxu1 %vm260_vm1, %v1173_v30  ;;  %1113 = vmatprep.subr.mxu1 %v1198_v37 }
  0x3a   :  { %1091 = vmatprep.mubr.msk.bf16.mxu1 %vm260_vm1, %v1174_v31  ;;  %1114 = vmatpush3.msra.mxu1 %v796_v53 }
  0x3b   :  { %1115 = vmatprep.subr.mxu1 %v1198_v37 }
  0x3c   :  { %1116 = vmatpush3.msra.mxu1 %v795_v57 }
  0x3d   :  { %1117 = vmatprep.subr.mxu1 %v1198_v37 }
  0x3e   :  { %1056 = vmatmul.mubr.msk.bf16.gmra.mxu0 %vm260_vm1, %v1157_v28  ;;  %1118 = vmatpush3.msra.mxu1 %v794_v61 }
  0x3f   :  { %1059 = vmatprep.mubr.msk.bf16.mxu0 %vm260_vm1, %v1158_v29  ;;  %1119 = vmatprep.subr.mxu1 %v1198_v37 }
  0x40   :  { %1120 = vmatpush3.msra.mxu1 %v793_v1 }
  0x41   :  { %1092 = vmatmul.mubr.msk.bf16.gmra.mxu1 %vm260_vm1, %v1175_v34  ;;  %1121 = vmatprep.subr.mxu1 %v1198_v37 }
  0x42   :  { %1127 = vmatprep.mubr.msk.f32.mxu1 %vm1199_vm2, %v1198_v37  ;;  %1122 = vmatpush3.msra.mxu1 %v792_v4 }
  0x43   :  { %1123 = vmatprep.subr.mxu1 %v1198_v37 }
  0x44   :  { %1124 = vmatpush3.msra.mxu1 %v791_v7 }
  0x45   :  { %1125 = vmatprep.subr.mxu1 %v1198_v37 }
  0x46   :  { %1060 = vmatmul.mubr.msk.bf16.gmra.mxu0 %vm260_vm1, %v1159_v32  ;;  %1126 = vmatpush3.msra.mxu1 %v790_v11 }
  0x47   :  { %1063 = vmatprep.mubr.msk.bf16.mxu0 %vm260_vm1, %v1160_v33 }
  0x4e   :  { %1064 = vmatmul.mubr.msk.bf16.gmra.mxu0 %vm260_vm1, %v1161_v35 }
  0xce   :  { %v1033_v45 = vpop.f32.mrf.mxu0  ;;  %v1413_v6 = vpop.f32.mrf.mxu1 }
  0xcf   :  { %v652_v54 = vmax.f32 %v1033_v45, 0.0 }
  0xd0   :  { %v395_v46 = vpop.f32.mrf.mxu0  ;;  %v1424_v15 = vpop.f32.mrf.mxu1 }
  0xd1   :  { %v650_v50 = vmax.f32 %v395_v46, 0.0 }
  0xd2   :  { %v1034_v47 = vpop.f32.mrf.mxu0  ;;  %v1427_v22 = vpop.f32.mrf.mxu1 }
  0xd3   :  { %v653_v58 = vmax.f32 %v1034_v47, 0.0 }
  0xd4   :  { %v398_v48 = vpop.f32.mrf.mxu0  ;;  %v1429_v29 = vpop.f32.mrf.mxu1 }
  0xd5   :  { %v651_v51 = vmax.f32 %v398_v48, 0.0 }
  0xd6   :  { %v1037_v52 = vpop.f32.mrf.mxu0  ;;  %v1431_v36 = vpop.f32.mrf.mxu1 }
  0xd7   :  { %v714_v55 = vadd.f32 %v651_v51, %v650_v50  ;;  %v656_v8 = vmax.f32 %v1037_v52, 0.0 }
  0xd8   :  { %v411_v56 = vpop.f32.mrf.mxu0  ;;  %v1433_v43 = vpop.f32.mrf.mxu1 }
  0xd9   :  { %v715_v59 = vadd.f32 %v714_v55, %v652_v54  ;;  %v654_v62 = vmax.f32 %v411_v56, 0.0 }
  0xda   :  { %v1038_v60 = vpop.f32.mrf.mxu0  ;;  %v1435_v50 = vpop.f32.mrf.mxu1 }
  0xdb   :  { %v716_v63 = vadd.f32 %v715_v59, %v653_v58  ;;  %v657_v12 = vmax.f32 %v1038_v60, 0.0 }
  0xdc   :  { %v414_v0 = vpop.f32.mrf.mxu0  ;;  %v1437_v57 = vpop.f32.mrf.mxu1 }
  0xdd   :  { %v717_v2 = vadd.f32 %v716_v63, %v654_v62  ;;  %v655_v3 = vmax.f32 %v414_v0, 0.0 }
  0xde   :  { %v1041_v5 = vpop.f32.mrf.mxu0 }
  0xdf   :  { %v718_v9 = vadd.f32 %v717_v2, %v655_v3  ;;  %v660_v23 = vmax.f32 %v1041_v5, 0.0 }
  0xe0   :  { %v427_v10 = vpop.f32.mrf.mxu0 }
  0xe1   :  { %v719_v13 = vadd.f32 %v718_v9, %v656_v8  ;;  %v658_v16 = vmax.f32 %v427_v10, 0.0  ;;  %v1439_v0 = vpop.f32.mrf.mxu1 }
  0xe2   :  { %v1042_v14 = vpop.f32.mrf.mxu0 }
  0xe3   :  { %v720_v17 = vadd.f32 %v719_v13, %v657_v12  ;;  %v661_v26 = vmax.f32 %v1042_v14, 0.0  ;;  %v571_v8 = vpop.f32.mrf.mxu1 }
  0xe4   :  { %v430_v18 = vpop.f32.mrf.mxu0 }
  0xe5   :  { %v721_v19 = vadd.f32 %v720_v17, %v658_v16  ;;  %v659_v20 = vmax.f32 %v430_v18, 0.0  ;;  %v1441_v16 = vpop.f32.mrf.mxu1 }
  0xe6   :  { %v1045_v21 = vpop.f32.mrf.mxu0 }
  0xe7   :  { %v722_v24 = vadd.f32 %v721_v19, %v659_v20  ;;  %v664_v37 = vmax.f32 %v1045_v21, 0.0 }
  0xe8   :  { %v443_v25 = vpop.f32.mrf.mxu0 }
  0xe9   :  { %v723_v27 = vadd.f32 %v722_v24, %v660_v23  ;;  %v662_v30 = vmax.f32 %v443_v25, 0.0  ;;  %v574_v24 = vpop.f32.mrf.mxu1 }
  0xea   :  { %v1046_v28 = vpop.f32.mrf.mxu0 }
  0xeb   :  { %v724_v31 = vadd.f32 %v723_v27, %v661_v26  ;;  %v665_v40 = vmax.f32 %v1046_v28, 0.0 }
  0xec   :  { %v446_v32 = vpop.f32.mrf.mxu0 }
  0xed   :  { %v725_v33 = vadd.f32 %v724_v31, %v662_v30  ;;  %v663_v34 = vmax.f32 %v446_v32, 0.0  ;;  %v1081_v32 = vpop.f32.mrf.mxu1 }
  0xee   :  { %v1049_v35 = vpop.f32.mrf.mxu0 }
  0xef   :  { %v726_v38 = vadd.f32 %v725_v33, %v663_v34  ;;  %v668_v51 = vmax.f32 %v1049_v35, 0.0 }
  0xf0   :  { %v459_v39 = vpop.f32.mrf.mxu0 }
  0xf1   :  { %v727_v41 = vadd.f32 %v726_v38, %v664_v37  ;;  %v666_v44 = vmax.f32 %v459_v39, 0.0 }
  0xf2   :  { %v1050_v42 = vpop.f32.mrf.mxu0 }
  0xf3   :  { %v728_v45 = vadd.f32 %v727_v41, %v665_v40  ;;  %v669_v54 = vmax.f32 %v1050_v42, 0.0  ;;  %v587_v40 = vpop.f32.mrf.mxu1 }
  0xf4   :  { %v462_v46 = vpop.f32.mrf.mxu0 }
  0xf5   :  { %v729_v47 = vadd.f32 %v728_v45, %v666_v44  ;;  %v667_v48 = vmax.f32 %v462_v46, 0.0  ;;  %v1082_v46 = vpop.f32.mrf.mxu1 }
  0xf6   :  { %v1053_v49 = vpop.f32.mrf.mxu0 }
  0xf7   :  { %v730_v52 = vadd.f32 %v729_v47, %v667_v48  ;;  %v672_v1 = vmax.f32 %v1053_v49, 0.0 }
  0xf8   :  { %v475_v53 = vpop.f32.mrf.mxu0 }
  0xf9   :  { %v731_v55 = vadd.f32 %v730_v52, %v668_v51  ;;  %v670_v58 = vmax.f32 %v475_v53, 0.0  ;;  %v590_v52 = vpop.f32.mrf.mxu1  ;;  %v686_v53 = vmax.f32 %v1424_v15, 0.0  ;;  %v692_v15 = vmax.f32 %v1431_v36, 0.0 }
  0xfa   :  { %v1054_v56 = vpop.f32.mrf.mxu0 }
  0xfb   :  { %v732_v59 = vadd.f32 %v731_v55, %v669_v54  ;;  %v673_v4 = vmax.f32 %v1054_v56, 0.0  ;;  %v687_v55 = vmax.f32 %v1429_v29, 0.0  ;;  %v693_v29 = vmax.f32 %v1435_v50, 0.0 }
  0xfc   :  { %v478_v60 = vpop.f32.mrf.mxu0  ;;  %v700_v50 = vmax.f32 %v1081_v32, 0.0 }
  0xfd   :  { %v733_v61 = vadd.f32 %v732_v59, %v670_v58  ;;  %v671_v62 = vmax.f32 %v478_v60, 0.0  ;;  %v1085_v58 = vpop.f32.mrf.mxu1  ;;  %v688_v59 = vmax.f32 %v1413_v6, 0.0  ;;  %v694_v6 = vmax.f32 %v571_v8, 0.0 }
  0xfe   :  { %v1057_v63 = vpop.f32.mrf.mxu0 }
  0xff   :  { %v734_v2 = vadd.f32 %v733_v61, %v671_v62  ;;  %v676_v17 = vmax.f32 %v1057_v63, 0.0  ;;  %v689_v61 = vmax.f32 %v1427_v22, 0.0  ;;  %v603_v63 = vpop.f32.mrf.mxu1  ;;  %v695_v22 = vmax.f32 %v574_v24, 0.0 }
 0x100   :  { %v491_v3 = vpop.f32.mrf.mxu0 }
 0x101   :  { %v735_v5 = vadd.f32 %v734_v2, %v672_v1  ;;  %v674_v9 = vmax.f32 %v491_v3, 0.0  ;;  %v690_v1 = vmax.f32 %v1433_v43, 0.0 }
 0x102   :  { %v1058_v7 = vpop.f32.mrf.mxu0 }
 0x103   :  { %v736_v10 = vadd.f32 %v735_v5, %v673_v4  ;;  %v677_v20 = vmax.f32 %v1058_v7, 0.0  ;;  %v691_v4 = vmax.f32 %v1437_v57, 0.0  ;;  %v1086_v5 = vpop.f32.mrf.mxu1 }
 0x104   :  { %v494_v11 = vpop.f32.mrf.mxu0 }
 0x105   :  { %v737_v12 = vadd.f32 %v736_v10, %v674_v9  ;;  %v675_v13 = vmax.f32 %v494_v11, 0.0  ;;  %v606_v10 = vpop.f32.mrf.mxu1 }
 0x106   :  { %v1061_v14 = vpop.f32.mrf.mxu0 }
 0x107   :  { %v738_v18 = vadd.f32 %v737_v12, %v675_v13  ;;  %v680_v33 = vmax.f32 %v1061_v14, 0.0  ;;  %v1089_v13 = vpop.f32.mrf.mxu1  ;;  %v696_v14 = vmax.f32 %v1439_v0, 0.0 }
 0x108   :  { %v507_v19 = vpop.f32.mrf.mxu0  ;;  %v708_v32 = vmax.f32 %v1089_v13, 0.0 }
 0x109   :  { %v739_v21 = vadd.f32 %v738_v18, %v676_v17  ;;  %v678_v25 = vmax.f32 %v507_v19, 0.0  ;;  %v697_v17 = vmax.f32 %v1441_v16, 0.0  ;;  %v619_v57 = vpop.f32.mrf.mxu1  ;;  %v698_v19 = vmax.f32 %v587_v40, 0.0 }
 0x10a   :  { %v1062_v23 = vpop.f32.mrf.mxu0  ;;  %v705_v16 = vmax.f32 %v1086_v5, 0.0 }
 0x10b   :  { %v740_v26 = vadd.f32 %v739_v21, %v677_v20  ;;  %v681_v37 = vmax.f32 %v1062_v23, 0.0  ;;  %v699_v21 = vmax.f32 %v590_v52, 0.0  ;;  %v1090_v23 = vpop.f32.mrf.mxu1 }
 0x10c   :  { %v510_v27 = vpop.f32.mrf.mxu0 }
 0x10d   :  { %v741_v28 = vadd.f32 %v740_v26, %v678_v25  ;;  %v679_v30 = vmax.f32 %v510_v27, 0.0  ;;  %v701_v26 = vmax.f32 %v1082_v46, 0.0  ;;  %v622_v27 = vpop.f32.mrf.mxu1 }
 0x10e   :  { %v1065_v31 = vpop.f32.mrf.mxu0 }
 0x10f   :  { %v742_v34 = vadd.f32 %v741_v28, %v679_v30  ;;  %v684_v47 = vmax.f32 %v1065_v31, 0.0  ;;  %v702_v28 = vmax.f32 %v603_v63, 0.0  ;;  %v703_v31 = vmax.f32 %v606_v10, 0.0  ;;  %v1093_v0 = vpop.f32.mrf.mxu1 }
 0x110   :  { %v523_v35 = vpop.f32.mrf.mxu0 }
 0x111   :  { %v743_v38 = vadd.f32 %v742_v34, %v680_v33  ;;  %v682_v44 = vmax.f32 %v523_v35, 0.0  ;;  %v704_v33 = vmax.f32 %v1085_v58, 0.0 }
 0x112   :  { %v1066_v39 = vpop.f32.mrf.mxu0 }
 0x113   :  { %v1443_v41 = vadd.f32 %v743_v38, %v681_v37  ;;  %v685_v49 = vmax.f32 %v1066_v39, 0.0  ;;  %v635_v37 = vpop.f32.mrf.mxu1  ;;  %v706_v38 = vmax.f32 %v619_v57, 0.0 }
 0x114   :  { %v526_v42 = vpop.f32.mrf.mxu0 }
 0x115   :  { %v683_v45 = vmax.f32 %v526_v42, 0.0  ;;  %v707_v42 = vmax.f32 %v622_v27, 0.0  ;;  %v745_v46 = vrot.slane %v1443_v41, 4 }
 0x117   :  { %v751_v48 = vadd.f32 %v683_v45, %v682_v44  ;;  %v1094_v44 = vpop.f32.mrf.mxu1 }
 0x119   :  { %v752_v51 = vadd.f32 %v751_v48, %v684_v47  ;;  %v709_v47 = vmax.f32 %v1090_v23, 0.0 }
 0x11b   :  { %v753_v54 = vadd.f32 %v752_v51, %v685_v49  ;;  %v638_v49 = vpop.f32.mrf.mxu1  ;;  %v710_v51 = vmax.f32 %v635_v37, 0.0 }
 0x11d   :  { %v754_v56 = vadd.f32 %v753_v54, %v686_v53  ;;  %v746_v53 = vadd.f32 %v745_v46, %v1443_v41 }
 0x11f   :  { %v755_v60 = vadd.f32 %v754_v56, %v687_v55  ;;  %v711_v55 = vmax.f32 %v638_v49, 0.0  ;;  %v712_v56 = vmax.f32 %v1093_v0, 0.0 }
 0x121   :  { %v756_v62 = vadd.f32 %v755_v60, %v688_v59  ;;  %v747_v59 = vrot.slane %v746_v53, 2  ;;  %v713_v60 = vmax.f32 %v1094_v44, 0.0 }
 0x123   :  { %v757_v2 = vadd.f32 %v756_v62, %v689_v61  ;;  %v748_v63 = vadd.f32 %v747_v59, %v746_v53 }
 0x125   :  { %v758_v3 = vadd.f32 %v757_v2, %v690_v1 }
 0x127   :  { %v759_v7 = vadd.f32 %v758_v3, %v691_v4  ;;  %v749_v3 = vrot.slane %v748_v63, 1 }
 0x129   :  { %v760_v9 = vadd.f32 %v759_v7, %v692_v15  ;;  %v750_v7 = vadd.f32 %v749_v3, %v748_v63 }
 0x12b   :  { %v761_v11 = vadd.f32 %v760_v9, %v693_v29  ;;  %v788_v9 = vmul.f32 0.00390625, %v750_v7 }
 0x12d   :  { %v762_v12 = vadd.f32 %v761_v11, %v694_v6 }
 0x12f   :  { %v763_v43 = vadd.f32 %v762_v12, %v695_v22 }
 0x131   :  { %v764_v18 = vadd.f32 %v763_v43, %v696_v14 }
 0x133   :  { %v765_v20 = vadd.f32 %v764_v18, %v697_v17 }
 0x135   :  { %v766_v36 = vadd.f32 %v765_v20, %v698_v19 }
 0x137   :  { %v767_v25 = vadd.f32 %v766_v36, %v699_v21 }
 0x139   :  { %v768_v8 = vadd.f32 %v767_v25, %v700_v50 }
 0x13b   :  { %v769_v24 = vadd.f32 %v768_v8, %v701_v26 }
 0x13d   :  { %v770_v30 = vadd.f32 %v769_v24, %v702_v28 }
 0x13f   :  { %v771_v34 = vadd.f32 %v770_v30, %v703_v31 }
 0x141   :  { %v772_v35 = vadd.f32 %v771_v34, %v704_v33 }
 0x143   :  { %v773_v39 = vadd.f32 %v772_v35, %v705_v16 }
 0x145   :  { %v774_v40 = vadd.f32 %v773_v39, %v706_v38 }
 0x147   :  { %v775_v45 = vadd.f32 %v774_v40, %v707_v42 }
 0x149   :  { %v776_v48 = vadd.f32 %v775_v45, %v708_v32 }
 0x14b   :  { %v777_v52 = vadd.f32 %v776_v48, %v709_v47 }
 0x14d   :  { %v778_v54 = vadd.f32 %v777_v52, %v710_v51 }
 0x14f   :  { %v779_v58 = vadd.f32 %v778_v54, %v711_v55 }
 0x151   :  { %v780_v61 = vadd.f32 %v779_v58, %v712_v56 }
 0x153   :  { %v781_v62 = vadd.f32 %v780_v61, %v713_v60 }
 0x155   :  { %v782_v1 = vrot.slane %v781_v62, 4 }
 0x157   :  { %v783_v2 = vadd.f32 %v782_v1, %v781_v62 }
 0x159   :  { %v784_v4 = vrot.slane %v783_v2, 2 }
 0x15b   :  { %v785_v5 = vadd.f32 %v784_v4, %v783_v2 }
 0x15d   :  { %v786_v15 = vrot.slane %v785_v5, 1 }
 0x15f   :  { %v787_v29 = vadd.f32 %v786_v15, %v785_v5 }
 0x161   :  { %v789_v41 = vmul.f32 0.00390625, %v787_v29 }
 0x163   :  { %v809_v10 = vsel %vm808_vm3, %v789_v41, %v788_v9 }
 0x164   :  { %1128 = vmatmul.mubr.f32.vlgmr.msra.gmra.mxu1 %v809_v10 }
 0x224   :  { %v877_v6 = vpop.f32.mrf.mxu1 }
 0x225   :  { %v882_v11 = vrot.slane %v877_v6, 1 }
 0x226   :  { %v1129_v12 = vpop.f32.mrf.mxu1 }
 0x227   :  { %v884_v22 = vmul.f32 %v882_v11, %v877_v6 }
 0x229   :  { %v886_v13 = vsel %vm885_vm4, %v884_v22, 0.0 }
 0x22a   :  { %887 = vadd.xlane.f32.xlu0 %v886_v13 }
 0x2b3   :  { %v888_v14 = vpop.xlane.xlu0 %887 }
 0x2b4   :  { %v889_v43 = vmul.f32 0.5, %v888_v14 }
 0x2b6   :  { %891 = vst.msk [vmem:[#allocation2] sm:$0x1] %vm890_vm5, %v889_v43 }
 0x2b7   :  { %1187 = shalt.err (!%p1184_p4)
}
 0x2b8   :  { %901 = dma.vmem_to_hbm [thread:$0]  %s899_s28, 16, %s1463_s3, [#allocation3]  }
 0x2b9   :  { %1196 = dma.done.wait [#allocation3], 16  }
 0x2ba   :  { %1197 = vsyncadd [#allocation3], 4294967280 }
 0x2bb   :  { %905 = vsyncpa [#allocation3], 1 }

</bundles_post_ra>
